<compile_context>
chip_gen: v5e
topology: v5e:2x2
jax: 0.10.0
libtpu: 0.0.40
codegen_flags: <defaults>
</compile_context>

<pallas_src>
import functools

import jax
import jax.numpy as jnp
from jax.experimental import pallas as pl
from jax.experimental.pallas import tpu as pltpu


def _soft_moe_kernel(x_ref, gx_ref, phi_ref, gs_ref,
                     w1_ref, b1_ref, w2_ref, b2_ref, o_ref,
                     *, num_experts, num_slots):
    E, S = num_experts, num_slots
    N, D = x_ref.shape
    cdt = x_ref.dtype                      # native MXU operand dtype (no f32 upcast)
    scale = float(D) ** 0.5
    inv_sqrt2 = 0.7071067811865476

    # ---- RMSNorm(x) = l2normalize(x, -1) * sqrt(D) * gamma   (torch F.normalize eps=1e-12)
    x = x_ref[...].astype(jnp.float32)
    x_nrm = jnp.sqrt(jnp.sum(x * x, axis=-1, keepdims=True))
    xn = x * (scale / jnp.maximum(x_nrm, 1e-12)) * gx_ref[...].astype(jnp.float32)
    x_mm = xn.astype(cdt)

    # ---- RMSNorm(slot embeddings)
    phi = phi_ref[...].astype(jnp.float32)
    p_nrm = jnp.sqrt(jnp.sum(phi * phi, axis=-1, keepdims=True))
    pn = phi * (scale / jnp.maximum(p_nrm, 1e-12)) * gs_ref[...].astype(jnp.float32)
    phi_mm = pn.astype(cdt)

    # ---- logits[n, e*S + s] = <x_n[n], phi_n[e, s]>           (N, E*S)
    logits = jax.lax.dot_general(x_mm, phi_mm, (((1,), (1,)), ((), ())),
                                 preferred_element_type=jnp.float32)

    # dispatch weights: softmax over the token axis (per slot)
    d = jnp.exp(logits - jnp.max(logits, axis=0, keepdims=True))
    dispatch = d / jnp.sum(d, axis=0, keepdims=True)

    # combine weights: softmax over the (expert, slot) axis (per token)
    c = jnp.exp(logits - jnp.max(logits, axis=1, keepdims=True))
    combine = c / jnp.sum(c, axis=1, keepdims=True)

    # slot inputs: slots = dispatch^T @ x_n                     (E*S, D)
    slots = jax.lax.dot_general(dispatch.astype(cdt), x_mm, (((0,), (0,)), ((), ())),
                                preferred_element_type=jnp.float32)
    combine_mm = combine.astype(cdt)

    acc = jnp.zeros((N, D), jnp.float32)
    for e in range(E):                                          # static unroll, E small
        se = slots[e * S:(e + 1) * S].astype(cdt)               # (S, D)
        h = jnp.dot(se, w1_ref[e], preferred_element_type=jnp.float32)
        h = h + b1_ref[e].astype(jnp.float32)
        h = 0.5 * h * (1.0 + jax.lax.erf(h * inv_sqrt2))        # exact GELU (PyTorch default)
        # dropout(p=0.0) is the identity
        y = jnp.dot(h.astype(cdt), w2_ref[e], preferred_element_type=jnp.float32)
        y = y + b2_ref[e].astype(jnp.float32)
        # fold this expert's slot outputs back into the token stream
        acc = acc + jnp.dot(combine_mm[:, e * S:(e + 1) * S], y.astype(cdt),
                            preferred_element_type=jnp.float32)

    o_ref[...] = acc.astype(o_ref.dtype)


def _vmem_limit_bytes(N, D, E, S, H, x_bytes, w_bytes):
    weights = (E * S * D + 2 * D + E * D * H + E * H + E * H * D + E * D) * w_bytes
    io = 2 * 2 * N * D * x_bytes                       # double-buffered x and out blocks
    interm = 4 * (3 * N * D + 2 * E * S * D + 4 * N * E * S + S * H + S * D)
    total = 2 * weights + io + 2 * interm + (8 << 20)  # margin for compiler scratch
    return int(min(max(total, 32 << 20), 64 << 20))


@jax.jit
def soft_moe_forward(x, gamma_x, slot_embeds, gamma_slot, w1, b1, w2, b2):
    """SoftMoE forward.

    x:           (B, N, D)
    gamma_x:     (D,)       RMSNorm gamma for tokens
    slot_embeds: (E, S, D)  learnable slot embeddings
    gamma_slot:  (D,)       RMSNorm gamma for slots
    w1, b1:      (E, D, H), (E, H)  per-expert fc1 (pre-transposed [in, out])
    w2, b2:      (E, H, D), (E, D)  per-expert fc2
    """
    B, N, D = x.shape
    E, S, _ = slot_embeds.shape
    H = w1.shape[-1]

    phi2d = slot_embeds.reshape(E * S, D)
    gx = gamma_x.reshape(1, D)
    gs = gamma_slot.reshape(1, D)
    b1r = b1.reshape(E, 1, H)
    b2r = b2.reshape(E, 1, D)

    def resident(shape):
        zeros = (0,) * len(shape)
        return pl.BlockSpec(shape, lambda b: zeros)

    kernel = functools.partial(_soft_moe_kernel, num_experts=E, num_slots=S)

    out = pl.pallas_call(
        kernel,
        out_shape=jax.ShapeDtypeStruct((B, N, D), x.dtype),
        grid_spec=pltpu.PrefetchScalarGridSpec(
            num_scalar_prefetch=0,
            grid=(B,),
            in_specs=[
                pl.BlockSpec((None, N, D), lambda b: (b, 0, 0)),  # x: one batch per step
                resident((1, D)),                                 # gamma_x
                resident((E * S, D)),                             # slot embeddings
                resident((1, D)),                                 # gamma_slot
                resident((E, D, H)),                              # w1
                resident((E, 1, H)),                              # b1
                resident((E, H, D)),                              # w2
                resident((E, 1, D)),                              # b2
            ],
            out_specs=pl.BlockSpec((None, N, D), lambda b: (b, 0, 0)),
        ),
        compiler_params=pltpu.CompilerParams(
            dimension_semantics=("parallel",),
            vmem_limit_bytes=_vmem_limit_bytes(
                N, D, E, S, H, x.dtype.itemsize, w1.dtype.itemsize),
        ),
    )(x, gx, phi2d, gs, w1, b1r, w2, b2r)
    return out


def _ref_soft_moe(x, gamma_x, slot_embeds, gamma_slot, w1, b1, w2, b2):
    D = x.shape[-1]
    scale = D ** 0.5

    def rmsnorm(v, g):
        n = jnp.sqrt(jnp.sum(v * v, axis=-1, keepdims=True))
        return v / jnp.maximum(n, 1e-12) * scale * g

    xn = rmsnorm(x, gamma_x)
    pn = rmsnorm(slot_embeds, gamma_slot)
    logits = jnp.einsum('bnd,esd->bnes', xn, pn)
    B, N, E, S = logits.shape
    dispatch = jax.nn.softmax(logits, axis=1)
    combine = jax.nn.softmax(logits.reshape(B, N, E * S), axis=-1)
    slots = jnp.einsum('bnd,bnes->besd', xn, dispatch)
    h = jnp.einsum('besd,edh->besh', slots, w1) + b1[:, None, :]
    h = 0.5 * h * (1.0 + jax.lax.erf(h / jnp.sqrt(2.0)))
    y = jnp.einsum('besh,ehd->besd', h, w2) + b2[:, None, :]
    y = y.reshape(B, E * S, D)
    return jnp.einsum('bns,bsd->bnd', combine, y)


if __name__ == "__main__":
    # Small shapes consistent with MixtureExpertsMlp defaults:
    # in_features=32, sequence_length=8, num_experts=4, num_slots=seq//experts=2, drop=0
    B, N, D = 2, 8, 32
    E = 4
    S = N // E
    H = 4 * D                       # expert FeedForward hidden (mult=4)

    key = jax.random.PRNGKey(0)
    ks = jax.random.split(key, 8)

    x = jax.random.normal(ks[0], (B, N, D), dtype=jnp.float32)
    gamma_x = 1.0 + 0.1 * jax.random.normal(ks[1], (D,), dtype=jnp.float32)
    slot_embeds = jax.random.normal(ks[2], (E, S, D), dtype=jnp.float32)
    gamma_slot = 1.0 + 0.1 * jax.random.normal(ks[3], (D,), dtype=jnp.float32)
    w1 = 0.05 * jax.random.normal(ks[4], (E, D, H), dtype=jnp.float32)
    b1 = 0.05 * jax.random.normal(ks[5], (E, H), dtype=jnp.float32)
    w2 = 0.05 * jax.random.normal(ks[6], (E, H, D), dtype=jnp.float32)
    b2 = 0.05 * jax.random.normal(ks[7], (E, D), dtype=jnp.float32)

    args = (x, gamma_x, slot_embeds, gamma_slot, w1, b1, w2, b2)

    out = jax.block_until_ready(soft_moe_forward(*args))

    ref = _ref_soft_moe(*args)
    assert out.shape == (B, N, D)
    assert jnp.allclose(out, ref, atol=1e-4, rtol=1e-4), "mismatch vs reference"
    print("KERNEL_OK")
</pallas_src>

<mosaic_0001>
module attributes {stable_mosaic.version = 11 : i64} {
  func.func @_soft_moe_kernel(%arg0: i32, %arg1: memref<1x8x32xf32, #tpu.memory_space<vmem>>, %arg2: memref<1x32xf32, #tpu.memory_space<vmem>>, %arg3: memref<8x32xf32, #tpu.memory_space<vmem>>, %arg4: memref<1x32xf32, #tpu.memory_space<vmem>>, %arg5: memref<4x32x128xf32, #tpu.memory_space<vmem>>, %arg6: memref<4x1x128xf32, #tpu.memory_space<vmem>>, %arg7: memref<4x128x32xf32, #tpu.memory_space<vmem>>, %arg8: memref<4x1x32xf32, #tpu.memory_space<vmem>>, %arg9: memref<1x8x32xf32, #tpu.memory_space<vmem>>) attributes {dimension_semantics = [#tpu.dimension_semantics<parallel>], iteration_bounds = array<i64: 2>, scalar_prefetch = 0 : i64, scratch_operands = 0 : i64, tpu.core_type = #tpu.core_type<tc>, window_params = [{transform_indices = @transform_0, window_bounds = array<i64: 1, 8, 32>}, {pipeline_mode = #tpu.pipeline_mode<synchronous>, transform_indices = @transform_1, window_bounds = array<i64: 1, 32>}, {pipeline_mode = #tpu.pipeline_mode<synchronous>, transform_indices = @transform_2, window_bounds = array<i64: 8, 32>}, {pipeline_mode = #tpu.pipeline_mode<synchronous>, transform_indices = @transform_3, window_bounds = array<i64: 1, 32>}, {pipeline_mode = #tpu.pipeline_mode<synchronous>, transform_indices = @transform_4, window_bounds = array<i64: 4, 32, 128>}, {pipeline_mode = #tpu.pipeline_mode<synchronous>, transform_indices = @transform_5, window_bounds = array<i64: 4, 1, 128>}, {pipeline_mode = #tpu.pipeline_mode<synchronous>, transform_indices = @transform_6, window_bounds = array<i64: 4, 128, 32>}, {pipeline_mode = #tpu.pipeline_mode<synchronous>, transform_indices = @transform_7, window_bounds = array<i64: 4, 1, 32>}, {transform_indices = @transform_8, window_bounds = array<i64: 1, 8, 32>}]} {
    %c0 = arith.constant 0 : index
    %c0_0 = arith.constant 0 : index
    %c0_1 = arith.constant 0 : index
    %0 = vector.load %arg1[%c0, %c0_0, %c0_1] : memref<1x8x32xf32, #tpu.memory_space<vmem>>, vector<1x8x32xf32>
    %1 = vector.shape_cast %0 : vector<1x8x32xf32> to vector<8x32xf32>
    %2 = arith.mulf %1, %1 : vector<8x32xf32>
    %cst = arith.constant dense<0.000000e+00> : vector<8xf32>
    %3 = vector.multi_reduction <add>, %2, %cst [1] : vector<8x32xf32> to vector<8xf32>
    %4 = vector.shape_cast %3 : vector<8xf32> to vector<8x1xf32>
    %5 = math.sqrt %4 : vector<8x1xf32>
    %cst_2 = arith.constant 9.99999996E-13 : f32
    %6 = vector.broadcast %cst_2 : f32 to vector<8x1xf32>
    %7 = arith.maximumf %5, %6 : vector<8x1xf32>
    %cst_3 = arith.constant 5.65685415 : f32
    %8 = vector.broadcast %cst_3 : f32 to vector<8x1xf32>
    %9 = arith.divf %8, %7 : vector<8x1xf32>
    %10 = vector.broadcast %9 : vector<8x1xf32> to vector<8x32xf32>
    %11 = arith.mulf %1, %10 : vector<8x32xf32>
    %c0_4 = arith.constant 0 : index
    %c0_5 = arith.constant 0 : index
    %12 = vector.load %arg2[%c0_4, %c0_5] : memref<1x32xf32, #tpu.memory_space<vmem>>, vector<1x32xf32>
    %13 = vector.broadcast %12 : vector<1x32xf32> to vector<8x32xf32>
    %14 = arith.mulf %11, %13 : vector<8x32xf32>
    %c0_6 = arith.constant 0 : index
    %c0_7 = arith.constant 0 : index
    %15 = vector.load %arg3[%c0_6, %c0_7] : memref<8x32xf32, #tpu.memory_space<vmem>>, vector<8x32xf32>
    %16 = arith.mulf %15, %15 : vector<8x32xf32>
    %cst_8 = arith.constant dense<0.000000e+00> : vector<8xf32>
    %17 = vector.multi_reduction <add>, %16, %cst_8 [1] : vector<8x32xf32> to vector<8xf32>
    %18 = vector.shape_cast %17 : vector<8xf32> to vector<8x1xf32>
    %19 = math.sqrt %18 : vector<8x1xf32>
    %cst_9 = arith.constant 9.99999996E-13 : f32
    %20 = vector.broadcast %cst_9 : f32 to vector<8x1xf32>
    %21 = arith.maximumf %19, %20 : vector<8x1xf32>
    %cst_10 = arith.constant 5.65685415 : f32
    %22 = vector.broadcast %cst_10 : f32 to vector<8x1xf32>
    %23 = arith.divf %22, %21 : vector<8x1xf32>
    %24 = vector.broadcast %23 : vector<8x1xf32> to vector<8x32xf32>
    %25 = arith.mulf %15, %24 : vector<8x32xf32>
    %c0_11 = arith.constant 0 : index
    %c0_12 = arith.constant 0 : index
    %26 = vector.load %arg4[%c0_11, %c0_12] : memref<1x32xf32, #tpu.memory_space<vmem>>, vector<1x32xf32>
    %27 = vector.broadcast %26 : vector<1x32xf32> to vector<8x32xf32>
    %28 = arith.mulf %25, %27 : vector<8x32xf32>
    %cst_13 = arith.constant dense<0.000000e+00> : vector<8x8xf32>
    %29 = tpu.matmul %14, %28, %cst_13 {dimension_numbers = #tpu.dot_dimension_numbers<[1], [1], [0], [0], [0, 0, 1, 0], [], []>} : vector<8x32xf32>, vector<8x32xf32>, vector<8x8xf32> -> vector<8x8xf32>
    %cst_14 = arith.constant dense<0xFF800000> : vector<8xf32>
    %30 = vector.multi_reduction <maximumf>, %29, %cst_14 [0] : vector<8x8xf32> to vector<8xf32>
    %31 = vector.shape_cast %30 : vector<8xf32> to vector<1x8xf32>
    %32 = vector.broadcast %31 : vector<1x8xf32> to vector<8x8xf32>
    %33 = arith.subf %29, %32 : vector<8x8xf32>
    %34 = math.exp %33 : vector<8x8xf32>
    %cst_15 = arith.constant dense<0.000000e+00> : vector<8xf32>
    %35 = vector.multi_reduction <add>, %34, %cst_15 [0] : vector<8x8xf32> to vector<8xf32>
    %36 = vector.shape_cast %35 : vector<8xf32> to vector<1x8xf32>
    %37 = vector.broadcast %36 : vector<1x8xf32> to vector<8x8xf32>
    %38 = arith.divf %34, %37 : vector<8x8xf32>
    %cst_16 = arith.constant dense<0xFF800000> : vector<8xf32>
    %39 = vector.multi_reduction <maximumf>, %29, %cst_16 [1] : vector<8x8xf32> to vector<8xf32>
    %40 = vector.shape_cast %39 : vector<8xf32> to vector<8x1xf32>
    %41 = vector.broadcast %40 : vector<8x1xf32> to vector<8x8xf32>
    %42 = arith.subf %29, %41 : vector<8x8xf32>
    %43 = math.exp %42 : vector<8x8xf32>
    %cst_17 = arith.constant dense<0.000000e+00> : vector<8xf32>
    %44 = vector.multi_reduction <add>, %43, %cst_17 [1] : vector<8x8xf32> to vector<8xf32>
    %45 = vector.shape_cast %44 : vector<8xf32> to vector<8x1xf32>
    %46 = vector.broadcast %45 : vector<8x1xf32> to vector<8x8xf32>
    %47 = arith.divf %43, %46 : vector<8x8xf32>
    %cst_18 = arith.constant dense<0.000000e+00> : vector<8x32xf32>
    %48 = tpu.matmul %38, %14, %cst_18 {dimension_numbers = #tpu.dot_dimension_numbers<[0], [0], [1], [1], [0, 1, 1, 1], [], []>} : vector<8x8xf32>, vector<8x32xf32>, vector<8x32xf32> -> vector<8x32xf32>
    %cst_19 = arith.constant 0.000000e+00 : f32
    %49 = vector.broadcast %cst_19 : f32 to vector<8x32xf32>
    %50 = vector.extract_strided_slice %48 {offsets = [0, 0], sizes = [2, 32], strides = [1, 1]} : vector<8x32xf32> to vector<2x32xf32>
    %c0_20 = arith.constant 0 : index
    %c0_21 = arith.constant 0 : index
    %c0_22 = arith.constant 0 : index
    %51 = vector.load %arg5[%c0_20, %c0_21, %c0_22] : memref<4x32x128xf32, #tpu.memory_space<vmem>>, vector<1x32x128xf32>
    %52 = vector.shape_cast %51 : vector<1x32x128xf32> to vector<32x128xf32>
    %cst_23 = arith.constant dense<0.000000e+00> : vector<2x128xf32>
    %53 = tpu.matmul %50, %52, %cst_23 {dimension_numbers = #tpu.dot_dimension_numbers<[1], [0], [0], [1], [0, 0, 1, 1], [], []>} : vector<2x32xf32>, vector<32x128xf32>, vector<2x128xf32> -> vector<2x128xf32>
    %c0_24 = arith.constant 0 : index
    %c0_25 = arith.constant 0 : index
    %c0_26 = arith.constant 0 : index
    %54 = vector.load %arg6[%c0_24, %c0_25, %c0_26] : memref<4x1x128xf32, #tpu.memory_space<vmem>>, vector<1x1x128xf32>
    %55 = vector.shape_cast %54 : vector<1x1x128xf32> to vector<1x128xf32>
    %56 = vector.broadcast %55 : vector<1x128xf32> to vector<2x128xf32>
    %57 = arith.addf %53, %56 : vector<2x128xf32>
    %cst_27 = arith.constant 5.000000e-01 : f32
    %58 = vector.broadcast %cst_27 : f32 to vector<2x128xf32>
    %59 = arith.mulf %58, %57 : vector<2x128xf32>
    %cst_28 = arith.constant 0.707106769 : f32
    %60 = vector.broadcast %cst_28 : f32 to vector<2x128xf32>
    %61 = arith.mulf %57, %60 : vector<2x128xf32>
    %62 = math.erf %61 : vector<2x128xf32>
    %cst_29 = arith.constant 1.000000e+00 : f32
    %63 = vector.broadcast %cst_29 : f32 to vector<2x128xf32>
    %64 = arith.addf %63, %62 : vector<2x128xf32>
    %65 = arith.mulf %59, %64 : vector<2x128xf32>
    %c0_30 = arith.constant 0 : index
    %c0_31 = arith.constant 0 : index
    %c0_32 = arith.constant 0 : index
    %66 = vector.load %arg7[%c0_30, %c0_31, %c0_32] : memref<4x128x32xf32, #tpu.memory_space<vmem>>, vector<1x128x32xf32>
    %67 = vector.shape_cast %66 : vector<1x128x32xf32> to vector<128x32xf32>
    %cst_33 = arith.constant dense<0.000000e+00> : vector<2x32xf32>
    %68 = tpu.matmul %65, %67, %cst_33 {dimension_numbers = #tpu.dot_dimension_numbers<[1], [0], [0], [1], [0, 0, 1, 1], [], []>} : vector<2x128xf32>, vector<128x32xf32>, vector<2x32xf32> -> vector<2x32xf32>
    %c0_34 = arith.constant 0 : index
    %c0_35 = arith.constant 0 : index
    %c0_36 = arith.constant 0 : index
    %69 = vector.load %arg8[%c0_34, %c0_35, %c0_36] : memref<4x1x32xf32, #tpu.memory_space<vmem>>, vector<1x1x32xf32>
    %70 = vector.shape_cast %69 : vector<1x1x32xf32> to vector<1x32xf32>
    %71 = vector.broadcast %70 : vector<1x32xf32> to vector<2x32xf32>
    %72 = arith.addf %68, %71 : vector<2x32xf32>
    %73 = vector.extract_strided_slice %47 {offsets = [0, 0], sizes = [8, 2], strides = [1, 1]} : vector<8x8xf32> to vector<8x2xf32>
    %cst_37 = arith.constant dense<0.000000e+00> : vector<8x32xf32>
    %74 = tpu.matmul %73, %72, %cst_37 {dimension_numbers = #tpu.dot_dimension_numbers<[1], [0], [0], [1], [0, 0, 1, 1], [], []>} : vector<8x2xf32>, vector<2x32xf32>, vector<8x32xf32> -> vector<8x32xf32>
    %75 = arith.addf %49, %74 : vector<8x32xf32>
    %76 = vector.extract_strided_slice %48 {offsets = [2, 0], sizes = [2, 32], strides = [1, 1]} : vector<8x32xf32> to vector<2x32xf32>
    %c1 = arith.constant 1 : index
    %c0_38 = arith.constant 0 : index
    %c0_39 = arith.constant 0 : index
    %77 = vector.load %arg5[%c1, %c0_38, %c0_39] : memref<4x32x128xf32, #tpu.memory_space<vmem>>, vector<1x32x128xf32>
    %78 = vector.shape_cast %77 : vector<1x32x128xf32> to vector<32x128xf32>
    %cst_40 = arith.constant dense<0.000000e+00> : vector<2x128xf32>
    %79 = tpu.matmul %76, %78, %cst_40 {dimension_numbers = #tpu.dot_dimension_numbers<[1], [0], [0], [1], [0, 0, 1, 1], [], []>} : vector<2x32xf32>, vector<32x128xf32>, vector<2x128xf32> -> vector<2x128xf32>
    %c1_41 = arith.constant 1 : index
    %c0_42 = arith.constant 0 : index
    %c0_43 = arith.constant 0 : index
    %80 = vector.load %arg6[%c1_41, %c0_42, %c0_43] : memref<4x1x128xf32, #tpu.memory_space<vmem>>, vector<1x1x128xf32>
    %81 = vector.shape_cast %80 : vector<1x1x128xf32> to vector<1x128xf32>
    %82 = vector.broadcast %81 : vector<1x128xf32> to vector<2x128xf32>
    %83 = arith.addf %79, %82 : vector<2x128xf32>
    %cst_44 = arith.constant 5.000000e-01 : f32
    %84 = vector.broadcast %cst_44 : f32 to vector<2x128xf32>
    %85 = arith.mulf %84, %83 : vector<2x128xf32>
    %cst_45 = arith.constant 0.707106769 : f32
    %86 = vector.broadcast %cst_45 : f32 to vector<2x128xf32>
    %87 = arith.mulf %83, %86 : vector<2x128xf32>
    %88 = math.erf %87 : vector<2x128xf32>
    %cst_46 = arith.constant 1.000000e+00 : f32
    %89 = vector.broadcast %cst_46 : f32 to vector<2x128xf32>
    %90 = arith.addf %89, %88 : vector<2x128xf32>
    %91 = arith.mulf %85, %90 : vector<2x128xf32>
    %c1_47 = arith.constant 1 : index
    %c0_48 = arith.constant 0 : index
    %c0_49 = arith.constant 0 : index
    %92 = vector.load %arg7[%c1_47, %c0_48, %c0_49] : memref<4x128x32xf32, #tpu.memory_space<vmem>>, vector<1x128x32xf32>
    %93 = vector.shape_cast %92 : vector<1x128x32xf32> to vector<128x32xf32>
    %cst_50 = arith.constant dense<0.000000e+00> : vector<2x32xf32>
    %94 = tpu.matmul %91, %93, %cst_50 {dimension_numbers = #tpu.dot_dimension_numbers<[1], [0], [0], [1], [0, 0, 1, 1], [], []>} : vector<2x128xf32>, vector<128x32xf32>, vector<2x32xf32> -> vector<2x32xf32>
    %c1_51 = arith.constant 1 : index
    %c0_52 = arith.constant 0 : index
    %c0_53 = arith.constant 0 : index
    %95 = vector.load %arg8[%c1_51, %c0_52, %c0_53] : memref<4x1x32xf32, #tpu.memory_space<vmem>>, vector<1x1x32xf32>
    %96 = vector.shape_cast %95 : vector<1x1x32xf32> to vector<1x32xf32>
    %97 = vector.broadcast %96 : vector<1x32xf32> to vector<2x32xf32>
    %98 = arith.addf %94, %97 : vector<2x32xf32>
    %99 = vector.extract_strided_slice %47 {offsets = [0, 2], sizes = [8, 2], strides = [1, 1]} : vector<8x8xf32> to vector<8x2xf32>
    %cst_54 = arith.constant dense<0.000000e+00> : vector<8x32xf32>
    %100 = tpu.matmul %99, %98, %cst_54 {dimension_numbers = #tpu.dot_dimension_numbers<[1], [0], [0], [1], [0, 0, 1, 1], [], []>} : vector<8x2xf32>, vector<2x32xf32>, vector<8x32xf32> -> vector<8x32xf32>
    %101 = arith.addf %75, %100 : vector<8x32xf32>
    %102 = vector.extract_strided_slice %48 {offsets = [4, 0], sizes = [2, 32], strides = [1, 1]} : vector<8x32xf32> to vector<2x32xf32>
    %c2 = arith.constant 2 : index
    %c0_55 = arith.constant 0 : index
    %c0_56 = arith.constant 0 : index
    %103 = vector.load %arg5[%c2, %c0_55, %c0_56] : memref<4x32x128xf32, #tpu.memory_space<vmem>>, vector<1x32x128xf32>
    %104 = vector.shape_cast %103 : vector<1x32x128xf32> to vector<32x128xf32>
    %cst_57 = arith.constant dense<0.000000e+00> : vector<2x128xf32>
    %105 = tpu.matmul %102, %104, %cst_57 {dimension_numbers = #tpu.dot_dimension_numbers<[1], [0], [0], [1], [0, 0, 1, 1], [], []>} : vector<2x32xf32>, vector<32x128xf32>, vector<2x128xf32> -> vector<2x128xf32>
    %c2_58 = arith.constant 2 : index
    %c0_59 = arith.constant 0 : index
    %c0_60 = arith.constant 0 : index
    %106 = vector.load %arg6[%c2_58, %c0_59, %c0_60] : memref<4x1x128xf32, #tpu.memory_space<vmem>>, vector<1x1x128xf32>
    %107 = vector.shape_cast %106 : vector<1x1x128xf32> to vector<1x128xf32>
    %108 = vector.broadcast %107 : vector<1x128xf32> to vector<2x128xf32>
    %109 = arith.addf %105, %108 : vector<2x128xf32>
    %cst_61 = arith.constant 5.000000e-01 : f32
    %110 = vector.broadcast %cst_61 : f32 to vector<2x128xf32>
    %111 = arith.mulf %110, %109 : vector<2x128xf32>
    %cst_62 = arith.constant 0.707106769 : f32
    %112 = vector.broadcast %cst_62 : f32 to vector<2x128xf32>
    %113 = arith.mulf %109, %112 : vector<2x128xf32>
    %114 = math.erf %113 : vector<2x128xf32>
    %cst_63 = arith.constant 1.000000e+00 : f32
    %115 = vector.broadcast %cst_63 : f32 to vector<2x128xf32>
    %116 = arith.addf %115, %114 : vector<2x128xf32>
    %117 = arith.mulf %111, %116 : vector<2x128xf32>
    %c2_64 = arith.constant 2 : index
    %c0_65 = arith.constant 0 : index
    %c0_66 = arith.constant 0 : index
    %118 = vector.load %arg7[%c2_64, %c0_65, %c0_66] : memref<4x128x32xf32, #tpu.memory_space<vmem>>, vector<1x128x32xf32>
    %119 = vector.shape_cast %118 : vector<1x128x32xf32> to vector<128x32xf32>
    %cst_67 = arith.constant dense<0.000000e+00> : vector<2x32xf32>
    %120 = tpu.matmul %117, %119, %cst_67 {dimension_numbers = #tpu.dot_dimension_numbers<[1], [0], [0], [1], [0, 0, 1, 1], [], []>} : vector<2x128xf32>, vector<128x32xf32>, vector<2x32xf32> -> vector<2x32xf32>
    %c2_68 = arith.constant 2 : index
    %c0_69 = arith.constant 0 : index
    %c0_70 = arith.constant 0 : index
    %121 = vector.load %arg8[%c2_68, %c0_69, %c0_70] : memref<4x1x32xf32, #tpu.memory_space<vmem>>, vector<1x1x32xf32>
    %122 = vector.shape_cast %121 : vector<1x1x32xf32> to vector<1x32xf32>
    %123 = vector.broadcast %122 : vector<1x32xf32> to vector<2x32xf32>
    %124 = arith.addf %120, %123 : vector<2x32xf32>
    %125 = vector.extract_strided_slice %47 {offsets = [0, 4], sizes = [8, 2], strides = [1, 1]} : vector<8x8xf32> to vector<8x2xf32>
    %cst_71 = arith.constant dense<0.000000e+00> : vector<8x32xf32>
    %126 = tpu.matmul %125, %124, %cst_71 {dimension_numbers = #tpu.dot_dimension_numbers<[1], [0], [0], [1], [0, 0, 1, 1], [], []>} : vector<8x2xf32>, vector<2x32xf32>, vector<8x32xf32> -> vector<8x32xf32>
    %127 = arith.addf %101, %126 : vector<8x32xf32>
    %128 = vector.extract_strided_slice %48 {offsets = [6, 0], sizes = [2, 32], strides = [1, 1]} : vector<8x32xf32> to vector<2x32xf32>
    %c3 = arith.constant 3 : index
    %c0_72 = arith.constant 0 : index
    %c0_73 = arith.constant 0 : index
    %129 = vector.load %arg5[%c3, %c0_72, %c0_73] : memref<4x32x128xf32, #tpu.memory_space<vmem>>, vector<1x32x128xf32>
    %130 = vector.shape_cast %129 : vector<1x32x128xf32> to vector<32x128xf32>
    %cst_74 = arith.constant dense<0.000000e+00> : vector<2x128xf32>
    %131 = tpu.matmul %128, %130, %cst_74 {dimension_numbers = #tpu.dot_dimension_numbers<[1], [0], [0], [1], [0, 0, 1, 1], [], []>} : vector<2x32xf32>, vector<32x128xf32>, vector<2x128xf32> -> vector<2x128xf32>
    %c3_75 = arith.constant 3 : index
    %c0_76 = arith.constant 0 : index
    %c0_77 = arith.constant 0 : index
    %132 = vector.load %arg6[%c3_75, %c0_76, %c0_77] : memref<4x1x128xf32, #tpu.memory_space<vmem>>, vector<1x1x128xf32>
    %133 = vector.shape_cast %132 : vector<1x1x128xf32> to vector<1x128xf32>
    %134 = vector.broadcast %133 : vector<1x128xf32> to vector<2x128xf32>
    %135 = arith.addf %131, %134 : vector<2x128xf32>
    %cst_78 = arith.constant 5.000000e-01 : f32
    %136 = vector.broadcast %cst_78 : f32 to vector<2x128xf32>
    %137 = arith.mulf %136, %135 : vector<2x128xf32>
    %cst_79 = arith.constant 0.707106769 : f32
    %138 = vector.broadcast %cst_79 : f32 to vector<2x128xf32>
    %139 = arith.mulf %135, %138 : vector<2x128xf32>
    %140 = math.erf %139 : vector<2x128xf32>
    %cst_80 = arith.constant 1.000000e+00 : f32
    %141 = vector.broadcast %cst_80 : f32 to vector<2x128xf32>
    %142 = arith.addf %141, %140 : vector<2x128xf32>
    %143 = arith.mulf %137, %142 : vector<2x128xf32>
    %c3_81 = arith.constant 3 : index
    %c0_82 = arith.constant 0 : index
    %c0_83 = arith.constant 0 : index
    %144 = vector.load %arg7[%c3_81, %c0_82, %c0_83] : memref<4x128x32xf32, #tpu.memory_space<vmem>>, vector<1x128x32xf32>
    %145 = vector.shape_cast %144 : vector<1x128x32xf32> to vector<128x32xf32>
    %cst_84 = arith.constant dense<0.000000e+00> : vector<2x32xf32>
    %146 = tpu.matmul %143, %145, %cst_84 {dimension_numbers = #tpu.dot_dimension_numbers<[1], [0], [0], [1], [0, 0, 1, 1], [], []>} : vector<2x128xf32>, vector<128x32xf32>, vector<2x32xf32> -> vector<2x32xf32>
    %c3_85 = arith.constant 3 : index
    %c0_86 = arith.constant 0 : index
    %c0_87 = arith.constant 0 : index
    %147 = vector.load %arg8[%c3_85, %c0_86, %c0_87] : memref<4x1x32xf32, #tpu.memory_space<vmem>>, vector<1x1x32xf32>
    %148 = vector.shape_cast %147 : vector<1x1x32xf32> to vector<1x32xf32>
    %149 = vector.broadcast %148 : vector<1x32xf32> to vector<2x32xf32>
    %150 = arith.addf %146, %149 : vector<2x32xf32>
    %151 = vector.extract_strided_slice %47 {offsets = [0, 6], sizes = [8, 2], strides = [1, 1]} : vector<8x8xf32> to vector<8x2xf32>
    %cst_88 = arith.constant dense<0.000000e+00> : vector<8x32xf32>
    %152 = tpu.matmul %151, %150, %cst_88 {dimension_numbers = #tpu.dot_dimension_numbers<[1], [0], [0], [1], [0, 0, 1, 1], [], []>} : vector<8x2xf32>, vector<2x32xf32>, vector<8x32xf32> -> vector<8x32xf32>
    %153 = arith.addf %127, %152 : vector<8x32xf32>
    %c0_89 = arith.constant 0 : index
    %c0_90 = arith.constant 0 : index
    %c0_91 = arith.constant 0 : index
    %154 = vector.load %arg9[%c0_89, %c0_90, %c0_91] : memref<1x8x32xf32, #tpu.memory_space<vmem>>, vector<1x8x32xf32>
    %155 = vector.shape_cast %154 : vector<1x8x32xf32> to vector<8x32xf32>
    %156 = vector.shape_cast %153 : vector<8x32xf32> to vector<1x8x32xf32>
    tpu.vector_store %arg9[%c0_89, %c0_90, %c0_91], %156 {strides = array<i32>} : memref<1x8x32xf32, #tpu.memory_space<vmem>>, vector<1x8x32xf32>,
    return
  }
  func.func @transform_0(%arg0: i32) -> (i32, i32, i32) {
    %c0_i32 = arith.constant 0 : i32
    %c0_i32_0 = arith.constant 0 : i32
    %c0_i32_1 = arith.constant 0 : i32
    return %arg0, %c0_i32, %c0_i32_0 : i32, i32, i32
  }
  func.func @transform_1(%arg0: i32) -> (i32, i32) {
    %c0_i32 = arith.constant 0 : i32
    %c0_i32_0 = arith.constant 0 : i32
    %c0_i32_1 = arith.constant 0 : i32
    return %c0_i32, %c0_i32_0 : i32, i32
  }
  func.func @transform_2(%arg0: i32) -> (i32, i32) {
    %c0_i32 = arith.constant 0 : i32
    %c0_i32_0 = arith.constant 0 : i32
    %c0_i32_1 = arith.constant 0 : i32
    return %c0_i32, %c0_i32_0 : i32, i32
  }
  func.func @transform_3(%arg0: i32) -> (i32, i32) {
    %c0_i32 = arith.constant 0 : i32
    %c0_i32_0 = arith.constant 0 : i32
    %c0_i32_1 = arith.constant 0 : i32
    return %c0_i32, %c0_i32_0 : i32, i32
  }
  func.func @transform_4(%arg0: i32) -> (i32, i32, i32) {
    %c0_i32 = arith.constant 0 : i32
    %c0_i32_0 = arith.constant 0 : i32
    %c0_i32_1 = arith.constant 0 : i32
    %c0_i32_2 = arith.constant 0 : i32
    return %c0_i32, %c0_i32_0, %c0_i32_1 : i32, i32, i32
  }
  func.func @transform_5(%arg0: i32) -> (i32, i32, i32) {
    %c0_i32 = arith.constant 0 : i32
    %c0_i32_0 = arith.constant 0 : i32
    %c0_i32_1 = arith.constant 0 : i32
    %c0_i32_2 = arith.constant 0 : i32
    return %c0_i32, %c0_i32_0, %c0_i32_1 : i32, i32, i32
  }
  func.func @transform_6(%arg0: i32) -> (i32, i32, i32) {
    %c0_i32 = arith.constant 0 : i32
    %c0_i32_0 = arith.constant 0 : i32
    %c0_i32_1 = arith.constant 0 : i32
    %c0_i32_2 = arith.constant 0 : i32
    return %c0_i32, %c0_i32_0, %c0_i32_1 : i32, i32, i32
  }
  func.func @transform_7(%arg0: i32) -> (i32, i32, i32) {
    %c0_i32 = arith.constant 0 : i32
    %c0_i32_0 = arith.constant 0 : i32
    %c0_i32_1 = arith.constant 0 : i32
    %c0_i32_2 = arith.constant 0 : i32
    return %c0_i32, %c0_i32_0, %c0_i32_1 : i32, i32, i32
  }
  func.func @transform_8(%arg0: i32) -> (i32, i32, i32) {
    %c0_i32 = arith.constant 0 : i32
    %c0_i32_0 = arith.constant 0 : i32
    %c0_i32_1 = arith.constant 0 : i32
    return %arg0, %c0_i32, %c0_i32_0 : i32, i32, i32
  }
}

</mosaic_0001>

<bundles_post_ra>
// kernel: soft_moe_forward.1
= control target key start
LH: loop header
LB: loop body
LE: loop exit
PB: predicated region body
PF: predicated region fallthrough
CT: control target
= control target key end

     0   :  { %13 = vsyncpa [#allocation3], 0  ;;  %s1917_s0 = inlined_call_operand.vmem [shape: f32[2,8,32], index: 0, kind: input, shape index: {}]   ;;  %s1918_s1 = inlined_call_operand.vmem [shape: f32[1,32], index: 1, kind: input, shape index: {}]   ;;  %s1919_s2 = inlined_call_operand.vmem [shape: f32[8,32], index: 2, kind: input, shape index: {}]   ;;  %s1920_s3 = inlined_call_operand.vmem [shape: f32[1,32], index: 3, kind: input, shape index: {}]   ;;  %s1921_s4 = inlined_call_operand.vmem [shape: f32[4,32,128], index: 4, kind: input, shape index: {}]   ;;  %s1922_s5 = inlined_call_operand.vmem [shape: f32[4,1,128], index: 5, kind: input, shape index: {}]   ;;  %s1923_s6 = inlined_call_operand.vmem [shape: f32[4,128,32], index: 6, kind: input, shape index: {}]   ;;  %s1924_s7 = inlined_call_operand.vmem [shape: f32[4,1,32], index: 7, kind: input, shape index: {}]   ;;  %s1925_s8 = inlined_call_operand.hbm [shape: f32[2,8,32], index: 8, kind: output, shape index: {}]  }
   0x1   :  { %15 = vsyncpa [#allocation3 + $0x1], 0  ;;  %s1460_s27 = smov 0   ;;  %s1462_s28 = smov 0  }
   0x2   :  { %s1464_s29 = smov 0   ;;  %s1466_s30 = smov 0  }
   0x3 LB: > { %s1481_s9 = sadd.s32 4294967295, %s1410_s30   ;;  %s1176_s10 = sadd.s32 4294967294, %s1410_s30   ;;  %s1410_s30 = sphi %s1466_s30, %s1931_s30   ;;  %s1406_s29 = sphi %s1464_s29, %s1930_s29   ;;  %s1402_s28 = sphi %s1462_s28, %s1929_s28   ;;  %s1398_s27 = sphi %s1460_s27, %s1928_s27  }
   0x4   : > { %s1485_s11 = sadd.s32 1, %s1410_s30   ;;  %s201_s12 = sadd.s32 1, %s1406_s29 }
   0x5   : > { %s198_s13 = ssub.s32 %s1410_s30, %s1485_s11  ;;  %p211_p0 = scmp.ne.s32.totalorder %s1406_s29, %s1402_s28 }
   0x6   : > { %p199_p1 = scmp.eq.s32.totalorder %s198_s13, 0  ;;  %p212_p2 = scmp.eq.s32.totalorder %s1481_s9, 1 }
   0x7   : > { %p217_p3 = scmp.ne.s32.totalorder %s1402_s28, %s1398_s27  ;;  %p218_p4 = scmp.eq.s32.totalorder %s1176_s10, 1 }
   0x8   : > { %s1496_s14 = scalar_select %p199_p1, %s1406_s29, %s201_s12  }
   0x9   : > { %p1498_p5 = por %p212_p2, %p211_p0  ;;  %p1502_p6 = por %p218_p4, %p217_p3 }
   0xa   : > { %p1179_p7 = scmp.ge.s32.totalorder %s1410_s30, 1  ;;  %p264_p8 = scmp.lt.s32.totalorder %s1410_s30, 3 }
   0xc   : > { %p265_p9 = pnand %p1179_p7, %p264_p8 }
   0xd   : > { %p297_p10 = scmp.lt.s32.totalorder (!%p265_p9), %s1481_s9, 1  ;;  %s1412_s18 = smov (!%p265_p9), 124  }
   0xe   : > { %268 = sbr.rel (%p265_p9) target bundleno = 1757 (0x6dd), region = 52  ;;  %s294_s25 = sand.u32 (!%p265_p9), 1, %s1402_s28  }
   0xf   : > { %s1180_s26 = sshll.u32 (!%p265_p9), %s294_s25, 3  ;;  %s1268_s10 = sshll.u32 (!%p265_p9), %s1481_s9, 3 }
  0x10   : > { %s1112_s17 = scalar_lea.hbm (!%p265_p9), %s1925_s8, %s1268_s10  ;;  %s1102_s21 = scalar_lea.sflag (!%p265_p9), [#allocation3], %s294_s25 }
  0x13   : > { %vm303_vm0 = vcmask 261120   ;;  %v1511_v0 = vld [vmem:[%s1919_s2] sm:$0xff]  ;;  %s298_s19 = scalar_select %p297_p10, %s1481_s9, 1  ;;  %vm406_vm13 = vcmask 64512  }
  0x14   : > { %v342_v1 = vmul.f32 %v1511_v0, %v1511_v0  ;;  %v1314_v43 = vld [vmem:[%s1920_s3] ss:$0 sm:$0xff] }
  0x15   : > { %s1181_s20 = sshll.u32 %s298_s19, 3  ;;  %v1315_v55 = vld [vmem:[%s1918_s1] ss:$0 sm:$0xff]  ;;  %s1413_s19 = smov 126  }
  0x16   : > { %v343_v2 = vsel %vm303_vm0, %v342_v1, 0.0  ;;  %s300_s23 = scalar_lea.vmem %s1917_s0, %s1181_s20  ;;  %s1414_s20 = smov 122  }
  0x17   : > { %344 = vadd.xlane.f32.xlu0 %v343_v2  ;;  %v1521_v3 = vld [vmem:[%s300_s23] sm:$0xff] }
  0x18   : > { %v302_v4 = vmul.f32 %v1521_v3, %v1521_v3 }
  0x1a   : > { %v304_v5 = vsel %vm303_vm0, %v302_v4, 0.0 }
  0x1f   : > { %305 = vadd.xlane.f32.xlu0 %v304_v5 }
  0x8a   : > { %v345_v6 = vpop.xlane.xlu0 %344 }
  0x8b   : > { %1324 = vrsqrt.f32 %v345_v6  ;;  %vm353_vm1 = vcmp.eq.f32.partialorder %v345_v6, inf  ;;  %v356_v18 = vand.u32 2147483648, %v345_v6  ;;  %vm355_vm2 = vcmp.eq.f32.partialorder %v345_v6, 0.0 }
  0x91   : > { %v1325_v7 = vpop.eup %1324 }
  0x92   : > { %v347_v8 = vmul.f32 %v1325_v7, %v345_v6  ;;  %v306_v9 = vpop.xlane.xlu0 %305 }
  0x93   : > { %1326 = vrsqrt.f32 %v306_v9  ;;  %vm314_vm3 = vcmp.eq.f32.partialorder %v306_v9, inf  ;;  %v317_v26 = vand.u32 2147483648, %v306_v9  ;;  %vm316_vm4 = vcmp.eq.f32.partialorder %v306_v9, 0.0 }
  0x94   : > { %v348_v10 = vmul.f32 %v1325_v7, %v347_v8 }
  0x96   : > { %v349_v11 = vmul.f32 0.5, %v348_v10 }
  0x98   : > { %v350_v12 = vsub.f32 1.5, %v349_v11 }
  0x99   : > { %v1327_v13 = vpop.eup %1326 }
  0x9a   : > { %v351_v14 = vmul.f32 %v1325_v7, %v350_v12  ;;  %v308_v15 = vmul.f32 %v1327_v13, %v306_v9 }
  0x9c   : > { %v352_v16 = vmul.f32 %v351_v14, %v345_v6  ;;  %v309_v17 = vmul.f32 %v1327_v13, %v308_v15 }
  0x9e   : > { %v354_v19 = vsel %vm353_vm1, %v345_v6, %v352_v16  ;;  %v310_v20 = vmul.f32 0.5, %v309_v17 }
  0x9f   : > { %v357_v21 = vsel %vm355_vm2, %v356_v18, %v354_v19 }
  0xa0   : > { %v358_v22 = vmax.f32 %v357_v21, 1e-12  ;;  %v311_v23 = vsub.f32 1.5, %v310_v20 }
  0xa2   : > { %1328 = vrcp.f32 %v358_v22  ;;  %v312_v24 = vmul.f32 %v1327_v13, %v311_v23  ;;  %v370_v33 = vand.u32 2147483648, %v358_v22  ;;  %v368_v35 = vand.u32 2147483647, %v358_v22 }
  0xa3   : > { %vm364_vm6 = vweird.f32 %v358_v22 }
  0xa4   : > { %v313_v25 = vmul.f32 %v312_v24, %v306_v9  ;;  %v371_v38 = vor.u32 1.1754944e-38, %v370_v33  ;;  %vm369_vm8 = vcmp.eq.f32.partialorder %v368_v35, 8.507059e+37  ;;  %v520_v24 = vld [vmem:[%s1921_s4 + $0x18] sm:$0xff]  ;;  %v1188_v35 = vld [vmem:[%s1921_s4 + $0x28] sm:$0xff] }
  0xa5   : > { %540 = vmatpush.msra.mxu2 %v520_v24 }
  0xa6   : > { %v315_v27 = vsel %vm314_vm3, %v306_v9, %v313_v25  ;;  %v519_v25 = vld [vmem:[%s1921_s4 + $0x10] sm:$0xff] }
  0xa7   : > { %v318_v28 = vsel %vm316_vm4, %v317_v26, %v315_v27  ;;  %v1190_v26 = vld [vmem:[%s1921_s4 + $0x38] sm:$0xff]  ;;  %v1189_v27 = vld [vmem:[%s1921_s4 + $0x30] sm:$0xff]  ;;  %541 = vmatpush.msra.mxu2 %v519_v25 }
  0xa8   : > { %v1329_v29 = vpop.eup %1328  ;;  %v319_v30 = vmax.f32 %v318_v28, 1e-12  ;;  %v518_v28 = vld [vmem:[%s1921_s4 + $0x8] sm:$0xff] }
  0xa9   : > { %v360_v31 = vmul.f32 %v1329_v29, %v358_v22  ;;  %vm365_vm5 = vweird.f32 %v1329_v29  ;;  %542 = vmatpush.msra.mxu2 %v518_v28 }
  0xaa   : > { %1330 = vrcp.f32 %v319_v30  ;;  %vm366_vm7 = vmor %vm364_vm6, %vm365_vm5  ;;  %v331_v45 = vand.u32 2147483648, %v319_v30  ;;  %v329_v48 = vand.u32 2147483647, %v319_v30  ;;  %vm325_vm10 = vweird.f32 %v319_v30 }
  0xab   : > { %v361_v32 = vsub.f32 1.0, %v360_v31 }
  0xac   : > { %v332_v51 = vor.u32 1.1754944e-38, %v331_v45  ;;  %vm330_vm12 = vcmp.eq.f32.partialorder %v329_v48, 8.507059e+37 }
  0xad   : > { %v362_v34 = vmul.f32 %v1329_v29, %v361_v32 }
  0xaf   : > { %v363_v36 = vadd.f32 %v1329_v29, %v362_v34  ;;  %v517_v34 = vld [vmem:[%s1921_s4] sm:$0xff] }
  0xb0   : > { %v1331_v37 = vpop.eup %1330  ;;  %543 = vmatpush.msra.mxu2 %v517_v34 }
  0xb1   : > { %v367_v39 = vsel %vm366_vm7, %v1329_v29, %v363_v36  ;;  %v321_v40 = vmul.f32 %v1331_v37, %v319_v30  ;;  %vm326_vm9 = vweird.f32 %v1331_v37  ;;  %v1187_v36 = vld [vmem:[%s1921_s4 + $0x20] sm:$0xff] }
  0xb2   : > { %v372_v41 = vsel %vm369_vm8, %v371_v38, %v367_v39  ;;  %vm327_vm11 = vmor %vm325_vm10, %vm326_vm9 }
  0xb3   : > { %v373_v42 = vmul.f32 5.656854, %v372_v41  ;;  %v322_v44 = vsub.f32 1.0, %v321_v40 }
  0xb5   : > { %v374_v46 = vmul.f32 %v373_v42, %v1511_v0  ;;  %v323_v47 = vmul.f32 %v1331_v37, %v322_v44 }
  0xb7   : > { %v379_v49 = vmul.f32 %v1314_v43, %v374_v46  ;;  %v324_v50 = vadd.f32 %v1331_v37, %v323_v47 }
  0xb9   : > { %1182 = vmatpush.xpose.msk.msra.mxu0 %vm303_vm0, %v379_v49  ;;  %v328_v52 = vsel %vm327_vm11, %v1331_v37, %v324_v50 }
  0xba   : > { %v333_v53 = vsel %vm330_vm12, %v332_v51, %v328_v52  ;;  %v1209_v51 = vld [vmem:[%s1923_s6 + $0xf8] sm:$0xff]  ;;  %v1208_v52 = vld [vmem:[%s1923_s6 + $0xf0] sm:$0xff] }
  0xbb   : > { %v334_v54 = vmul.f32 5.656854, %v333_v53  ;;  %v607_v53 = vld [vmem:[%s1923_s6 + $0x78] sm:$0xff] }
  0xbc   : > { %612 = vmatpush.msra.mxu3 %v607_v53 }
  0xbd   : > { %v335_v56 = vmul.f32 %v334_v54, %v1521_v3  ;;  %731 = vmatpush.msrb.mxu0 %v1209_v51  ;;  %v1207_v54 = vld [vmem:[%s1923_s6 + $0xe8] sm:$0xff] }
  0xbe   : > { %v593_v51 = vld [vmem:[%s1923_s6 + $0x8] sm:$0xff] }
  0xbf   : > { %v340_v57 = vmul.f32 %v1315_v55, %v335_v56  ;;  %732 = vmatpush.msrb.mxu0 %v1208_v52  ;;  %v1316_v55 = vld [vmem:[%s1922_s5 + $0x1] ss:$0 sm:$0xff]  ;;  %v606_v56 = vld [vmem:[%s1923_s6 + $0x70] sm:$0xff] }
  0xc0   : > { %613 = vmatpush.msra.mxu3 %v606_v56  ;;  %v592_v56 = vld [vmem:[%s1923_s6] sm:$0xff] }
  0xc1   : > { %1183 = vmatmul.msk.f32.vlgmr.msra.gmra.mxu0 %vm303_vm0, %v340_v57  ;;  %512 = vmatpush.msra.mxu1 %v340_v57  ;;  %v1206_v57 = vld [vmem:[%s1923_s6 + $0xe0] sm:$0xff] }
  0xc2   : > { %733 = vmatpush.msrb.mxu0 %v1207_v54 }
  0xc3   : > { %657 = vmatpush.msrb.mxu1 %v1190_v26  ;;  %v598_v26 = vld [vmem:[%s1923_s6 + $0x30] sm:$0xff] }
  0xc4   : > { %734 = vmatpush.msrb.mxu0 %v1206_v57 }
  0xc5   : > { %658 = vmatpush.msrb.mxu1 %v1189_v27  ;;  %v1198_v27 = vld [vmem:[%s1923_s6 + $0xa0] sm:$0xff] }
  0xc7   : > { %659 = vmatpush.msrb.mxu1 %v1188_v35  ;;  %v1196_v35 = vld [vmem:[%s1923_s6 + $0x90] sm:$0xff] }
  0xc9   : > { %660 = vmatpush.msrb.mxu1 %v1187_v36 }
 0x13e   : > { %v403_v58 = vpop.f32.mrf.mxu0 }
 0x13f   : > { %v407_v59 = vsel %vm406_vm13, %v403_v58, -inf }
 0x140   : > { %v408_v60 = vrot.slane %v407_v59, 4 }
 0x142   : > { %v409_v61 = vmax.f32 %v407_v59, %v408_v60 }
 0x144   : > { %v410_v62 = vrot.slane %v409_v61, 2 }
 0x146   : > { %v411_v63 = vmax.f32 %v409_v61, %v410_v62  ;;  %v1317_v62 = vld [vmem:[%s1922_s5] ss:$0 sm:$0xff] }
 0x148   : > { %v412_v0 = vrot.slane %v411_v63, 1 }
 0x14a   : > { %v413_v1 = vmax.f32 %v411_v63, %v412_v0  ;;  %v604_v63 = vld [vmem:[%s1923_s6 + $0x60] sm:$0xff]  ;;  %v1204_v0 = vld [vmem:[%s1923_s6 + $0xd0] sm:$0xff] }
 0x14c   : > { %v414_v2 = vsub.f32 %v403_v58, %v413_v1 }
 0x14e   : > { %v415_v4 = vmul.f32 1.442695, %v414_v2  ;;  %v603_v2 = vld [vmem:[%s1923_s6 + $0x58] sm:$0xff] }
 0x150   : > { %1332 = vpow2.f32 %v415_v4  ;;  %v1203_v4 = vld [vmem:[%s1923_s6 + $0xc8] sm:$0xff] }
 0x156   : > { %v1333_v5 = vpop.eup %1332 }
 0x157   : > { %v417_v3 = vsel %vm406_vm13, %v1333_v5, 0.0 }
 0x158   : > { %v418_v6 = vrot.slane %v417_v3, 4 }
 0x15a   : > { %v419_v7 = vadd.f32 %v418_v6, %v417_v3 }
 0x15c   : > { %v420_v8 = vrot.slane %v419_v7, 2 }
 0x15e   : > { %v421_v9 = vadd.f32 %v420_v8, %v419_v7  ;;  %v602_v7 = vld [vmem:[%s1923_s6 + $0x50] sm:$0xff]  ;;  %v1202_v8 = vld [vmem:[%s1923_s6 + $0xc0] sm:$0xff] }
 0x160   : > { %v422_v10 = vrot.slane %v421_v9, 1 }
 0x162   : > { %v423_v11 = vadd.f32 %v422_v10, %v421_v9 }
 0x164   : > { %1334 = vrcp.f32 %v423_v11  ;;  %v435_v15 = vand.u32 2147483648, %v423_v11  ;;  %v433_v17 = vand.u32 2147483647, %v423_v11  ;;  %vm429_vm15 = vweird.f32 %v423_v11 }
 0x166   : > { %v436_v19 = vor.u32 1.1754944e-38, %v435_v15  ;;  %vm434_vm2 = vcmp.eq.f32.partialorder %v433_v17, 8.507059e+37  ;;  %v1200_v17 = vld [vmem:[%s1923_s6 + $0xb0] sm:$0xff] }
 0x16a   : > { %v1335_v12 = vpop.eup %1334 }
 0x16b   : > { %v425_v13 = vmul.f32 %v1335_v12, %v423_v11  ;;  %vm430_vm14 = vweird.f32 %v1335_v12  ;;  %v601_v11 = vld [vmem:[%s1923_s6 + $0x48] sm:$0xff] }
 0x16c   : > { %vm431_vm1 = vmor %vm429_vm15, %vm430_vm14  ;;  %vm757_vm15 = vcmask 1041408  }
 0x16d   : > { %v426_v14 = vsub.f32 1.0, %v425_v13 }
 0x16f   : > { %v427_v16 = vmul.f32 %v1335_v12, %v426_v14 }
 0x171   : > { %v428_v18 = vadd.f32 %v1335_v12, %v427_v16  ;;  %v600_v16 = vld [vmem:[%s1923_s6 + $0x40] sm:$0xff] }
 0x173   : > { %v432_v20 = vsel %vm431_vm1, %v1335_v12, %v428_v18  ;;  %v1201_v12 = vld [vmem:[%s1923_s6 + $0xb8] sm:$0xff]  ;;  %vm754_vm1 = vcmask 15360  }
 0x174   : > { %v437_v21 = vsel %vm434_vm2, %v436_v19, %v432_v20 }
 0x175   : > { %v438_v22 = vmul.f32 %v1333_v5, %v437_v21  ;;  %v599_v21 = vld [vmem:[%s1923_s6 + $0x38] sm:$0xff] }
 0x177   : > { %462 = vxpose.xlu1.b32.start.end [1/1] (short) (narrow) %v438_v22, 8  ;;  %v1199_v22 = vld [vmem:[%s1923_s6 + $0xa8] sm:$0xff] }
 0x1d7   : > { %439 = vmax.xlane.f32.xlu1 %v407_v59  ;;  %v1205_v59 = vld [vmem:[%s1923_s6 + $0xd8] sm:$0xff] }
 0x1d8   : > { %735 = vmatpush.msrb.mxu0 %v1205_v59 }
 0x1da   : > { %736 = vmatpush.msrb.mxu0 %v1204_v0 }
 0x1dc   : > { %737 = vmatpush.msrb.mxu0 %v1203_v4 }
 0x1de   : > { %738 = vmatpush.msrb.mxu0 %v1202_v8 }
 0x1e0   : > { %739 = vmatpush.msrb.mxu0 %v1201_v12 }
 0x1e2   : > { %740 = vmatpush.msrb.mxu0 %v1200_v17 }
 0x1e4   : > { %741 = vmatpush.msrb.mxu0 %v1199_v22 }
 0x1e6   : > { %742 = vmatpush.msrb.mxu0 %v1198_v27 }
 0x21b   : > { %v478_v23 = vpop.trf.xlu1 }
 0x21c   : > { %1184 = vmatmul.msk.f32.vlgmr.msra.gmra.mxu1 %vm406_vm13, %v478_v23 }
 0x24a   : > { %v440_v29 = vpop.xlane.xlu1 %439 }
 0x24b   : > { %v441_v30 = vsub.f32 %v403_v58, %v440_v29  ;;  %v605_v58 = vld [vmem:[%s1923_s6 + $0x68] sm:$0xff] }
 0x24c   : > { %614 = vmatpush.msra.mxu3 %v605_v58  ;;  %v597_v29 = vld [vmem:[%s1923_s6 + $0x28] sm:$0xff] }
 0x24d   : > { %v442_v31 = vmul.f32 1.442695, %v441_v30  ;;  %v1197_v30 = vld [vmem:[%s1923_s6 + $0x98] sm:$0xff] }
 0x24e   : > { %615 = vmatpush.msra.mxu3 %v604_v63  ;;  %743 = vmatpush.msrb.mxu0 %v1197_v30 }
 0x24f   : > { %1336 = vpow2.f32 %v442_v31  ;;  %v596_v31 = vld [vmem:[%s1923_s6 + $0x20] sm:$0xff] }
 0x250   : > { %616 = vmatpush.msra.mxu3 %v603_v2  ;;  %744 = vmatpush.msrb.mxu0 %v1196_v35 }
 0x252   : > { %617 = vmatpush.msra.mxu3 %v602_v7 }
 0x254   : > { %618 = vmatpush.msra.mxu3 %v601_v11 }
 0x255   : > { %v1337_v32 = vpop.eup %1336 }
 0x256   : > { %v444_v33 = vsel %vm406_vm13, %v1337_v32, 0.0  ;;  %619 = vmatpush.msra.mxu3 %v600_v16 }
 0x257   : > { %445 = vadd.xlane.f32.xlu2 %v444_v33 }
 0x258   : > { %620 = vmatpush.msra.mxu3 %v599_v21 }
 0x25a   : > { %621 = vmatpush.msra.mxu3 %v598_v26 }
 0x25c   : > { %622 = vmatpush.msra.mxu3 %v597_v29 }
 0x25e   : > { %623 = vmatpush.msra.mxu3 %v596_v31 }
 0x299   : > { %v1564_v37 = vpop.f32.mrf.mxu1 }
 0x29a   : > { %v642_v38 = vrot.slane %v1564_v37, 2  ;;  %1185 = vmatmul.msk.f32.vlgmr.msra.gmra.mxu2 %vm303_vm0, %v1564_v37 }
 0x29c   : > { %1192 = vmatmul.msk.f32.vlgmr.msrb.gmra.mxu1 %vm303_vm0, %v642_v38 }
 0x2ca   : > { %v446_v39 = vpop.xlane.xlu2 %445 }
 0x2cb   : > { %1338 = vrcp.f32 %v446_v39  ;;  %v458_v43 = vand.u32 2147483648, %v446_v39  ;;  %v456_v45 = vand.u32 2147483647, %v446_v39  ;;  %vm452_vm4 = vweird.f32 %v446_v39 }
 0x2cd   : > { %v459_v47 = vor.u32 1.1754944e-38, %v458_v43  ;;  %vm457_vm6 = vcmp.eq.f32.partialorder %v456_v45, 8.507059e+37  ;;  %v594_v45 = vld [vmem:[%s1923_s6 + $0x10] sm:$0xff] }
 0x2d1   : > { %v1339_v40 = vpop.eup %1338 }
 0x2d2   : > { %v448_v41 = vmul.f32 %v1339_v40, %v446_v39  ;;  %vm453_vm3 = vweird.f32 %v1339_v40 }
 0x2d3   : > { %vm454_vm5 = vmor %vm452_vm4, %vm453_vm3 }
 0x2d4   : > { %v449_v42 = vsub.f32 1.0, %v448_v41  ;;  %v1195_v41 = vld [vmem:[%s1923_s6 + $0x88] sm:$0xff] }
 0x2d5   : > { %745 = vmatpush.msrb.mxu0 %v1195_v41 }
 0x2d6   : > { %v450_v44 = vmul.f32 %v1339_v40, %v449_v42 }
 0x2d8   : > { %v451_v46 = vadd.f32 %v1339_v40, %v450_v44 }
 0x2da   : > { %v455_v48 = vsel %vm454_vm5, %v1339_v40, %v451_v46  ;;  %v595_v40 = vld [vmem:[%s1923_s6 + $0x18] sm:$0xff] }
 0x2db   : > { %v460_v49 = vsel %vm457_vm6, %v459_v47, %v455_v48  ;;  %624 = vmatpush.msra.mxu3 %v595_v40  ;;  %v1194_v47 = vld [vmem:[%s1923_s6 + $0x80] sm:$0xff] }
 0x2dc   : > { %v1570_v50 = vmul.f32 %v1337_v32, %v460_v49  ;;  %746 = vmatpush.msrb.mxu0 %v1194_v47 }
 0x2dd   : > { %625 = vmatpush.msra.mxu3 %v594_v45  ;;  %v1318_v45 = vld [vmem:[%s1924_s7 + $0x1] ss:$0 sm:$0xff] }
 0x2de   : > { %925 = vrot.lane.b32.xlu0 %v1570_v50, %s1412_s18  ;;  %752 = vrot.lane.b32.xlu2 %v1570_v50, %s1413_s19  ;;  %s296_s18 = scalar_lea.vmem [#allocation2], %s1180_s26  ;;  %s1368_s26 = scalar_lea.hbm %s1925_s8, 16 }
 0x2df   : > { %626 = vmatpush.msra.mxu3 %v593_v51  ;;  %v1215_v51 = vld [vmem:[%s1921_s4 + $0x40] sm:$0xff]  ;;  %s1114_s19 = sshll.u32 %s296_s18, 4  ;;  %s1115_s19 = int_to_ptr.vmem [resolvable:$true] %s1114_s19 }
 0x2e1   : > { %627 = vmatpush.msra.mxu3 %v592_v56  ;;  %v1237_v56 = vld [vmem:[%s1923_s6 + $0x178] sm:$0xff] }
 0x2e6   : > { %1072 = vrot.lane.b32.xlu2 %v1570_v50, %s1414_s20  ;;  %s1116_s20 = sshll.u32 %s1112_s17, 4  ;;  %s1117_s20 = int_to_ptr.hbm [resolvable:$true] %s1116_s20 }
 0x2e7   : > { %s1362_s22 = sshra.s32 %s1117_s20, 4  ;;  %s1363_s22 = int_to_ptr.hbm [resolvable:$true] %s1362_s22 }
 0x2e8   : > { %s1364_s23 = scalar_lea.hbm %s1363_s22, 8  ;;  %p1369_p0 = scmp.lt.s32.totalorder %s1363_s22, %s1925_s8 }
 0x2e9   : > { %p1365_p11 = scmp.ne.s32.totalorder %s1363_s22, %s1364_s23  ;;  %p1370_p1 = scmp.lt.s32.totalorder %s1368_s26, %s1364_s23 }
 0x2eb   : > { %p1366_p12 = pnand %p1365_p11, %p1498_p5  ;;  %p1371_p2 = por %p1370_p1, %p1369_p0 }
 0x2ed   : > { %p1367_p13 = pneg %p1366_p12 }
 0x2ef   : > { %p1372_p3 = pnand %p1371_p2, %p1367_p13 }
 0x319   : > { %v662_v60 = vpop.f32.mrf.mxu1 }
 0x31a   : > { %v1602_v61 = vadd.f32 %v1316_v55, %v662_v60 }
 0x31c   : > { %v1614_v1 = vmul.f32 0.70710677, %v1602_v61  ;;  %v665_v35 = vmul.f32 0.5, %v1602_v61  ;;  %v1218_v61 = vld [vmem:[%s1921_s4 + $0x58] sm:$0xff] }
 0x31d   : > { %v545_v5 = vpop.f32.mrf.mxu2 }
 0x31e   : > { %v667_v3 = vmul.f32 %v1614_v1, %v1614_v1  ;;  %v1624_v6 = vadd.f32 %v1317_v62, %v545_v5 }
 0x320   : > { %v1632_v9 = vmin.f32 %v667_v3, 16.0  ;;  %v1635_v10 = vmul.f32 0.70710677, %v1624_v6 }
 0x322   : > { %v669_v13 = vmul.f32 2.1237322e-06, %v1632_v9  ;;  %v680_v14 = vmul.f32 3.8918573e-05, %v1632_v9  ;;  %v550_v15 = vmul.f32 %v1635_v10, %v1635_v10 }
 0x324   : > { %v670_v18 = vadd.f32 0.00028619796, %v669_v13  ;;  %v681_v19 = vadd.f32 0.001143296, %v680_v14  ;;  %v1653_v20 = vmin.f32 %v550_v15, 16.0 }
 0x326   : > { %v671_v23 = vmul.f32 %v670_v18, %v1632_v9  ;;  %v682_v24 = vmul.f32 %v681_v19, %v1632_v9  ;;  %v552_v25 = vmul.f32 2.1237322e-06, %v1653_v20  ;;  %v563_v28 = vmul.f32 3.8918573e-05, %v1653_v20 }
 0x328   : > { %v672_v32 = vadd.f32 0.0036580483, %v671_v23  ;;  %v683_v33 = vadd.f32 0.014752088, %v682_v24  ;;  %v553_v34 = vadd.f32 0.00028619796, %v552_v25 }
 0x329   : > { %v564_v36 = vadd.f32 0.001143296, %v563_v28 }
 0x32a   : > { %v684_v38 = vmul.f32 %v683_v33, %v1632_v9  ;;  %v554_v39 = vmul.f32 %v553_v34, %v1653_v20  ;;  %v673_v43 = vmul.f32 %v672_v32, %v1632_v9 }
 0x32b   : > { %v565_v42 = vmul.f32 %v564_v36, %v1653_v20 }
 0x32c   : > { %v685_v44 = vadd.f32 0.112945676, %v684_v38  ;;  %v555_v46 = vadd.f32 0.0036580483, %v554_v39  ;;  %v674_v53 = vadd.f32 0.05243302, %v673_v43 }
 0x32d   : > { %v566_v48 = vadd.f32 0.014752088, %v565_v42  ;;  %v548_v42 = vmul.f32 0.5, %v1624_v6  ;;  %v1217_v6 = vld [vmem:[%s1921_s4 + $0x50] sm:$0xff] }
 0x32e   : > { %v686_v49 = vmul.f32 %v685_v44, %v1632_v9  ;;  %v556_v55 = vmul.f32 %v555_v46, %v1653_v20  ;;  %v675_v60 = vmul.f32 %v674_v53, %v1632_v9 }
 0x32f   : > { %v567_v52 = vmul.f32 %v566_v48, %v1653_v20  ;;  %v1216_v48 = vld [vmem:[%s1921_s4 + $0x48] sm:$0xff] }
 0x330   : > { %v687_v54 = vadd.f32 0.4994258, %v686_v49  ;;  %v557_v63 = vadd.f32 0.05243302, %v556_v55  ;;  %v676_v4 = vadd.f32 0.18741608, %v675_v60 }
 0x331   : > { %v568_v57 = vadd.f32 0.112945676, %v567_v52  ;;  %v1319_v49 = vld [vmem:[%s1924_s7] ss:$0 sm:$0xff]  ;;  %v816_v52 = vrot.slane %v1564_v37, 4 }
 0x332   : > { %v688_v58 = vmul.f32 %v687_v54, %v1632_v9  ;;  %v558_v5 = vmul.f32 %v557_v63, %v1653_v20  ;;  %v677_v8 = vmul.f32 %v676_v4, %v1632_v9  ;;  %v1231_v4 = vld [vmem:[%s1923_s6 + $0x148] sm:$0xff] }
 0x333   : > { %v569_v59 = vmul.f32 %v568_v57, %v1653_v20  ;;  %v1236_v57 = vld [vmem:[%s1923_s6 + $0x170] sm:$0xff] }
 0x334   : > { %v689_v62 = vadd.f32 1.0, %v688_v58  ;;  %v559_v12 = vadd.f32 0.18741608, %v558_v5  ;;  %v678_v14 = vadd.f32 1.1283791, %v677_v8  ;;  %v1235_v58 = vld [vmem:[%s1923_s6 + $0x168] sm:$0xff] }
 0x335   : > { %v570_v0 = vadd.f32 0.4994258, %v569_v59  ;;  %v1234_v59 = vld [vmem:[%s1923_s6 + $0x160] sm:$0xff]  ;;  %v1229_v8 = vld [vmem:[%s1923_s6 + $0x138] sm:$0xff] }
 0x336   : > { %1340 = vrcp.f32 %v689_v62  ;;  %v701_v15 = vand.u32 2147483648, %v689_v62  ;;  %v699_v18 = vand.u32 2147483647, %v689_v62  ;;  %v560_v19 = vmul.f32 %v559_v12, %v1653_v20 }
 0x337   : > { %v571_v2 = vmul.f32 %v570_v0, %v1653_v20  ;;  %vm695_vm8 = vweird.f32 %v689_v62  ;;  %v679_v23 = vmul.f32 %v678_v14, %v1614_v1  ;;  %v1232_v0 = vld [vmem:[%s1923_s6 + $0x150] sm:$0xff] }
 0x338   : > { %v702_v24 = vor.u32 1.1754944e-38, %v701_v15  ;;  %vm700_vm10 = vcmp.eq.f32.partialorder %v699_v18, 8.507059e+37  ;;  %v561_v26 = vadd.f32 1.1283791, %v560_v19  ;;  %v753_v47 = vpop.permute.xlu2 %752  ;;  %v1226_v19 = vld [vmem:[%s1923_s6 + $0x120] sm:$0xff] }
 0x339   : > { %v572_v3 = vadd.f32 1.0, %v571_v2 }
 0x33a   : > { %v562_v34 = vmul.f32 %v561_v26, %v1635_v10 }
 0x33b   : > { %1342 = vrcp.f32 %v572_v3  ;;  %v584_v27 = vand.u32 2147483648, %v572_v3  ;;  %v582_v30 = vand.u32 2147483647, %v572_v3  ;;  %vm578_vm12 = vweird.f32 %v572_v3 }
 0x33c   : > { %v1341_v7 = vpop.eup %1340 }
 0x33d   : > { %v691_v11 = vmul.f32 %v1341_v7, %v689_v62  ;;  %vm696_vm7 = vweird.f32 %v1341_v7  ;;  %v585_v33 = vor.u32 1.1754944e-38, %v584_v27  ;;  %vm583_vm14 = vcmp.eq.f32.partialorder %v582_v30, 8.507059e+37  ;;  %v1233_v62 = vld [vmem:[%s1923_s6 + $0x158] sm:$0xff]  ;;  %v1223_v27 = vld [vmem:[%s1923_s6 + $0x108] sm:$0xff] }
 0x33e   : > { %vm697_vm9 = vmor %vm695_vm8, %vm696_vm7 }
 0x33f   : > { %v692_v13 = vsub.f32 1.0, %v691_v11 }
 0x341   : > { %v1343_v16 = vpop.eup %1342  ;;  %v693_v17 = vmul.f32 %v1341_v7, %v692_v13  ;;  %v1228_v13 = vld [vmem:[%s1923_s6 + $0x130] sm:$0xff] }
 0x342   : > { %v574_v21 = vmul.f32 %v1343_v16, %v572_v3  ;;  %vm579_vm11 = vweird.f32 %v1343_v16  ;;  %v1230_v3 = vld [vmem:[%s1923_s6 + $0x140] sm:$0xff] }
 0x343   : > { %v694_v22 = vadd.f32 %v1341_v7, %v693_v17  ;;  %vm580_vm13 = vmor %vm578_vm12, %vm579_vm11 }
 0x344   : > { %v575_v25 = vsub.f32 1.0, %v574_v21 }
 0x345   : > { %v698_v9 = vsel %vm697_vm9, %v1341_v7, %v694_v22 }
 0x346   : > { %v703_v28 = vsel %vm700_vm10, %v702_v24, %v698_v9  ;;  %v576_v29 = vmul.f32 %v1343_v16, %v575_v25  ;;  %v1224_v25 = vld [vmem:[%s1923_s6 + $0x110] sm:$0xff] }
 0x347   : > { %v704_v31 = vmul.f32 %v703_v28, %v679_v23  ;;  %v1225_v23 = vld [vmem:[%s1923_s6 + $0x118] sm:$0xff]  ;;  %v1222_v28 = vld [vmem:[%s1923_s6 + $0x100] sm:$0xff] }
 0x348   : > { %v577_v32 = vadd.f32 %v1343_v16, %v576_v29 }
 0x349   : > { %v1193_v20 = vclamps-f32 %v704_v31, 1.0 }
 0x34a   : > { %v581_v1 = vsel %vm580_vm13, %v1343_v16, %v577_v32  ;;  %v1227_v16 = vld [vmem:[%s1923_s6 + $0x128] sm:$0xff] }
 0x34b   : > { %v707_v36 = vadd.f32 1.0, %v1193_v20  ;;  %v586_v38 = vsel %vm583_vm14, %v585_v33, %v581_v1 }
 0x34c   : > { %v587_v39 = vmul.f32 %v586_v38, %v562_v34 }
 0x34d   : > { %v708_v40 = vmul.f32 %v707_v36, %v665_v35 }
 0x34e   : > { %v1186_v41 = vclamps-f32 %v587_v39, 1.0 }
 0x34f   : > { %747 = vmatmul.f32.vlgmr.msrb.gmra.mxu0 %v708_v40 }
 0x350   : > { %v590_v43 = vadd.f32 1.0, %v1186_v41 }
 0x352   : > { %v591_v44 = vmul.f32 %v590_v43, %v548_v42 }
 0x354   : > { %628 = vmatmul.f32.vlgmr.msra.gmra.mxu3 %v591_v44 }
 0x3cc   : > { %v748_v10 = vpop.f32.mrf.mxu0 }
 0x3cd   : > { %v749_v46 = vadd.f32 %v1318_v45, %v748_v10 }
 0x3cf   : > { %1211 = vmatpush.msk.msrb.mxu2 %vm757_vm15, %v749_v46 }
 0x3d0   : > { %1212 = vmatmul.msk.f32.vlgmr.msrb.gmra.mxu2 %vm754_vm1, %v753_v47 }
 0x3d1   : > { %831 = vmatpush.msra.mxu2 %v1218_v61 }
 0x3d3   : > { %832 = vmatpush.msra.mxu2 %v1217_v6 }
 0x3d5   : > { %833 = vmatpush.msra.mxu2 %v1216_v48 }
 0x3d7   : > { %v629_v53 = vpop.f32.mrf.mxu3  ;;  %834 = vmatpush.msra.mxu2 %v1215_v51 }
 0x3d8   : > { %v630_v54 = vadd.f32 %v1319_v49, %v629_v53  ;;  %1220 = vmatmul.msk.f32.vlgmr.msra.gmra.mxu2 %vm303_vm0, %v816_v52  ;;  %v1321_v52 = vld [vmem:[%s1924_s7 + $0x2] ss:$0 sm:$0xff] }
 0x3da   : > { %1213 = vmatpush.msk.msra.mxu1 %vm757_vm15, %v630_v54 }
 0x3db   : > { %1214 = vmatmul.msk.f32.vlgmr.msra.gmra.mxu1 %vm754_vm1, %v1570_v50  ;;  %v1320_v50 = vld [vmem:[%s1922_s5 + $0x2] ss:$0 sm:$0xff] }
 0x3dc   : > { %905 = vmatpush.msrb.mxu1 %v1237_v56  ;;  %v1244_v56 = vld [vmem:[%s1921_s4 + $0x78] sm:$0xff] }
 0x3de   : > { %906 = vmatpush.msrb.mxu1 %v1236_v57  ;;  %v926_v57 = vpop.permute.xlu0 %925 }
 0x3e0   : > { %907 = vmatpush.msrb.mxu1 %v1235_v58  ;;  %v1243_v58 = vld [vmem:[%s1921_s4 + $0x70] sm:$0xff] }
 0x3e2   : > { %908 = vmatpush.msrb.mxu1 %v1234_v59  ;;  %v1241_v59 = vld [vmem:[%s1921_s4 + $0x60] sm:$0xff] }
 0x3e4   : > { %909 = vmatpush.msrb.mxu1 %v1233_v62 }
 0x3e6   : > { %910 = vmatpush.msrb.mxu1 %v1232_v0  ;;  %v1263_v0 = vld [vmem:[%s1923_s6 + $0x1f8] sm:$0xff] }
 0x3e7   : > { %1052 = vmatpush.msrb.mxu3 %v1263_v0 }
 0x3e8   : > { %911 = vmatpush.msrb.mxu1 %v1231_v4  ;;  %v1262_v4 = vld [vmem:[%s1923_s6 + $0x1f0] sm:$0xff] }
 0x3e9   : > { %1053 = vmatpush.msrb.mxu3 %v1262_v4 }
 0x3ea   : > { %912 = vmatpush.msrb.mxu1 %v1230_v3 }
 0x3ec   : > { %913 = vmatpush.msrb.mxu1 %v1229_v8 }
 0x3ee   : > { %914 = vmatpush.msrb.mxu1 %v1228_v13  ;;  %v1257_v13 = vld [vmem:[%s1923_s6 + $0x1c8] sm:$0xff] }
 0x3f0   : > { %915 = vmatpush.msrb.mxu1 %v1227_v16 }
 0x3f2   : > { %916 = vmatpush.msrb.mxu1 %v1226_v19 }
 0x3f4   : > { %917 = vmatpush.msrb.mxu1 %v1225_v23 }
 0x3f6   : > { %918 = vmatpush.msrb.mxu1 %v1224_v25 }
 0x3f8   : > { %919 = vmatpush.msrb.mxu1 %v1223_v27  ;;  %v1251_v27 = vld [vmem:[%s1923_s6 + $0x198] sm:$0xff] }
 0x3fa   : > { %920 = vmatpush.msrb.mxu1 %v1222_v28 }
 0x453   : > { %v1744_v55 = vpop.f32.mrf.mxu2 }
 0x458   : > { %v803_v51 = vpop.f32.mrf.mxu1 }
 0x459   : > { %v804_v62 = vadd.f32 %v803_v51, %v1744_v55  ;;  %v1322_v55 = vld [vmem:[%s1922_s5 + $0x3] ss:$0 sm:$0xff] }
 0x45b   : > { %v836_v60 = vpop.f32.mrf.mxu2 }
 0x45c   : > { %v1764_v63 = vadd.f32 %v1320_v50, %v836_v60  ;;  %v1242_v50 = vld [vmem:[%s1921_s4 + $0x68] sm:$0xff]  ;;  %v963_v60 = vrot.slane %v1564_v37, 6 }
 0x45d   : > { %v1261_v37 = vld [vmem:[%s1923_s6 + $0x1e8] sm:$0xff] }
 0x45e   : > { %v840_v2 = vmul.f32 0.70710677, %v1764_v63  ;;  %v839_v6 = vmul.f32 0.5, %v1764_v63  ;;  %1054 = vmatpush.msrb.mxu3 %v1261_v37 }
 0x460   : > { %v841_v5 = vmul.f32 %v840_v2, %v840_v2 }
 0x462   : > { %v842_v7 = vmin.f32 %v841_v5, 16.0  ;;  %v1260_v5 = vld [vmem:[%s1923_s6 + $0x1e0] sm:$0xff] }
 0x463   : > { %1055 = vmatpush.msrb.mxu3 %v1260_v5 }
 0x464   : > { %v843_v11 = vmul.f32 2.1237322e-06, %v842_v7  ;;  %v854_v12 = vmul.f32 3.8918573e-05, %v842_v7 }
 0x466   : > { %v844_v14 = vadd.f32 0.00028619796, %v843_v11  ;;  %v855_v15 = vadd.f32 0.001143296, %v854_v12  ;;  %v1258_v11 = vld [vmem:[%s1923_s6 + $0x1d0] sm:$0xff] }
 0x468   : > { %v845_v17 = vmul.f32 %v844_v14, %v842_v7  ;;  %v856_v18 = vmul.f32 %v855_v15, %v842_v7  ;;  %v1256_v15 = vld [vmem:[%s1923_s6 + $0x1c0] sm:$0xff] }
 0x46a   : > { %v857_v21 = vadd.f32 0.014752088, %v856_v18  ;;  %v846_v22 = vadd.f32 0.0036580483, %v845_v17  ;;  %v1255_v17 = vld [vmem:[%s1923_s6 + $0x1b8] sm:$0xff] }
 0x46c   : > { %v858_v24 = vmul.f32 %v857_v21, %v842_v7  ;;  %v847_v26 = vmul.f32 %v846_v22, %v842_v7  ;;  %v1254_v21 = vld [vmem:[%s1923_s6 + $0x1b0] sm:$0xff] }
 0x46e   : > { %v859_v9 = vadd.f32 0.112945676, %v858_v24  ;;  %v848_v31 = vadd.f32 0.05243302, %v847_v26  ;;  %v1253_v24 = vld [vmem:[%s1923_s6 + $0x1a8] sm:$0xff]  ;;  %v1252_v26 = vld [vmem:[%s1923_s6 + $0x1a0] sm:$0xff] }
 0x470   : > { %v860_v29 = vmul.f32 %v859_v9, %v842_v7  ;;  %v849_v33 = vmul.f32 %v848_v31, %v842_v7 }
 0x472   : > { %v861_v30 = vadd.f32 0.4994258, %v860_v29  ;;  %v850_v34 = vadd.f32 0.18741608, %v849_v33 }
 0x474   : > { %v862_v32 = vmul.f32 %v861_v30, %v842_v7  ;;  %v851_v35 = vmul.f32 %v850_v34, %v842_v7  ;;  %v1259_v7 = vld [vmem:[%s1923_s6 + $0x1d8] sm:$0xff]  ;;  %v1250_v30 = vld [vmem:[%s1923_s6 + $0x190] sm:$0xff]  ;;  %v1248_v34 = vld [vmem:[%s1923_s6 + $0x180] sm:$0xff] }
 0x475   : > { %1056 = vmatpush.msrb.mxu3 %v1259_v7 }
 0x476   : > { %v863_v20 = vadd.f32 1.0, %v862_v32  ;;  %v852_v40 = vadd.f32 1.1283791, %v851_v35  ;;  %v1249_v32 = vld [vmem:[%s1923_s6 + $0x188] sm:$0xff] }
 0x477   : > { %1057 = vmatpush.msrb.mxu3 %v1258_v11 }
 0x478   : > { %1344 = vrcp.f32 %v863_v20  ;;  %v875_v39 = vand.u32 2147483648, %v863_v20  ;;  %v873_v42 = vand.u32 2147483647, %v863_v20  ;;  %vm869_vm3 = vweird.f32 %v863_v20 }
 0x479   : > { %v853_v45 = vmul.f32 %v852_v40, %v840_v2  ;;  %1058 = vmatpush.msrb.mxu3 %v1257_v13 }
 0x47a   : > { %v876_v44 = vor.u32 1.1754944e-38, %v875_v39  ;;  %vm874_vm5 = vcmp.eq.f32.partialorder %v873_v42, 8.507059e+37 }
 0x47b   : > { %1059 = vmatpush.msrb.mxu3 %v1256_v15 }
 0x47d   : > { %1060 = vmatpush.msrb.mxu3 %v1255_v17 }
 0x47e   : > { %v1345_v1 = vpop.eup %1344 }
 0x47f   : > { %v865_v36 = vmul.f32 %v1345_v1, %v863_v20  ;;  %vm870_vm2 = vweird.f32 %v1345_v1  ;;  %1061 = vmatpush.msrb.mxu3 %v1254_v21 }
 0x480   : > { %vm871_vm4 = vmor %vm869_vm3, %vm870_vm2 }
 0x481   : > { %v866_v38 = vsub.f32 1.0, %v865_v36  ;;  %1062 = vmatpush.msrb.mxu3 %v1253_v24 }
 0x483   : > { %v867_v41 = vmul.f32 %v1345_v1, %v866_v38  ;;  %1063 = vmatpush.msrb.mxu3 %v1252_v26 }
 0x485   : > { %v868_v43 = vadd.f32 %v1345_v1, %v867_v41  ;;  %1064 = vmatpush.msrb.mxu3 %v1251_v27 }
 0x487   : > { %v872_v10 = vsel %vm871_vm4, %v1345_v1, %v868_v43  ;;  %1065 = vmatpush.msrb.mxu3 %v1250_v30 }
 0x488   : > { %v877_v46 = vsel %vm874_vm5, %v876_v44, %v872_v10 }
 0x489   : > { %v878_v61 = vmul.f32 %v877_v46, %v853_v45  ;;  %1066 = vmatpush.msrb.mxu3 %v1249_v32 }
 0x48b   : > { %v1221_v47 = vclamps-f32 %v878_v61, 1.0  ;;  %1067 = vmatpush.msrb.mxu3 %v1248_v34 }
 0x48d   : > { %v881_v48 = vadd.f32 1.0, %v1221_v47 }
 0x48f   : > { %v882_v49 = vmul.f32 %v881_v48, %v839_v6 }
 0x491   : > { %921 = vmatmul.f32.vlgmr.msrb.gmra.mxu1 %v882_v49 }
 0x50e   : > { %v922_v53 = vpop.f32.mrf.mxu1 }
 0x50f   : > { %v923_v54 = vadd.f32 %v1321_v52, %v922_v53 }
 0x511   : > { %1239 = vmatpush.msk.msrb.mxu2 %vm757_vm15, %v923_v54 }
 0x512   : > { %1240 = vmatmul.msk.f32.vlgmr.msrb.gmra.mxu2 %vm754_vm1, %v926_v57 }
 0x513   : > { %978 = vmatpush.msra.mxu2 %v1244_v56 }
 0x515   : > { %979 = vmatpush.msra.mxu2 %v1243_v58 }
 0x517   : > { %980 = vmatpush.msra.mxu2 %v1242_v50  ;;  %v1323_v50 = vld [vmem:[%s1924_s7 + $0x3] ss:$0 sm:$0xff] }
 0x519   : > { %981 = vmatpush.msra.mxu2 %v1241_v59 }
 0x51a   : > { %1246 = vmatmul.msk.f32.vlgmr.msra.gmra.mxu2 %vm303_vm0, %v963_v60 }
 0x595   : > { %v949_v63 = vpop.f32.mrf.mxu2 }
 0x596   : > { %v1824_v2 = vadd.f32 %v949_v63, %v804_v62  ;;  %v1073_v62 = vpop.permute.xlu2 %1072 }
 0x59d   : > { %v983_v3 = vpop.f32.mrf.mxu2 }
 0x59e   : > { %v1841_v8 = vadd.f32 %v1322_v55, %v983_v3 }
 0x5a0   : > { %v987_v12 = vmul.f32 0.70710677, %v1841_v8  ;;  %v986_v56 = vmul.f32 0.5, %v1841_v8 }
 0x5a2   : > { %v988_v14 = vmul.f32 %v987_v12, %v987_v12 }
 0x5a4   : > { %v989_v16 = vmin.f32 %v988_v14, 16.0 }
 0x5a6   : > { %v990_v18 = vmul.f32 2.1237322e-06, %v989_v16  ;;  %v1001_v19 = vmul.f32 3.8918573e-05, %v989_v16 }
 0x5a8   : > { %v991_v22 = vadd.f32 0.00028619796, %v990_v18  ;;  %v1002_v23 = vadd.f32 0.001143296, %v1001_v19 }
 0x5aa   : > { %v992_v25 = vmul.f32 %v991_v22, %v989_v16  ;;  %v1003_v9 = vmul.f32 %v1002_v23, %v989_v16 }
 0x5ac   : > { %v1004_v28 = vadd.f32 0.014752088, %v1003_v9  ;;  %v993_v29 = vadd.f32 0.0036580483, %v992_v25 }
 0x5ae   : > { %v1005_v31 = vmul.f32 %v1004_v28, %v989_v16  ;;  %v994_v33 = vmul.f32 %v993_v29, %v989_v16 }
 0x5b0   : > { %v1006_v20 = vadd.f32 0.112945676, %v1005_v31  ;;  %v995_v36 = vadd.f32 0.05243302, %v994_v33 }
 0x5b2   : > { %v1007_v1 = vmul.f32 %v1006_v20, %v989_v16  ;;  %v996_v40 = vmul.f32 %v995_v36, %v989_v16 }
 0x5b4   : > { %v1008_v35 = vadd.f32 0.4994258, %v1007_v1  ;;  %v997_v41 = vadd.f32 0.18741608, %v996_v40 }
 0x5b6   : > { %v1009_v38 = vmul.f32 %v1008_v35, %v989_v16  ;;  %v998_v43 = vmul.f32 %v997_v41, %v989_v16 }
 0x5b8   : > { %v1010_v39 = vadd.f32 1.0, %v1009_v38  ;;  %v999_v46 = vadd.f32 1.1283791, %v998_v43 }
 0x5ba   : > { %1346 = vrcp.f32 %v1010_v39  ;;  %v1022_v10 = vand.u32 2147483648, %v1010_v39  ;;  %v1020_v47 = vand.u32 2147483647, %v1010_v39  ;;  %vm1016_vm7 = vweird.f32 %v1010_v39 }
 0x5bb   : > { %v1000_v49 = vmul.f32 %v999_v46, %v987_v12 }
 0x5bc   : > { %v1023_v48 = vor.u32 1.1754944e-38, %v1022_v10  ;;  %vm1021_vm9 = vcmp.eq.f32.partialorder %v1020_v47, 8.507059e+37 }
 0x5c0   : > { %v1347_v42 = vpop.eup %1346 }
 0x5c1   : > { %v1012_v44 = vmul.f32 %v1347_v42, %v1010_v39  ;;  %vm1017_vm6 = vweird.f32 %v1347_v42 }
 0x5c2   : > { %vm1018_vm8 = vmor %vm1016_vm7, %vm1017_vm6 }
 0x5c3   : > { %v1013_v45 = vsub.f32 1.0, %v1012_v44 }
 0x5c5   : > { %v1014_v61 = vmul.f32 %v1347_v42, %v1013_v45 }
 0x5c7   : > { %v1015_v6 = vadd.f32 %v1347_v42, %v1014_v61 }
 0x5c9   : > { %v1019_v51 = vsel %vm1018_vm8, %v1347_v42, %v1015_v6 }
 0x5ca   : > { %v1024_v52 = vsel %vm1021_vm9, %v1023_v48, %v1019_v51 }
 0x5cb   : > { %v1025_v53 = vmul.f32 %v1024_v52, %v1000_v49 }
 0x5cd   : > { %v1247_v54 = vclamps-f32 %v1025_v53, 1.0 }
 0x5cf   : > { %v1028_v57 = vadd.f32 1.0, %v1247_v54 }
 0x5d1   : > { %v1029_v58 = vmul.f32 %v1028_v57, %v986_v56 }
 0x5d3   : > { %1068 = vmatmul.f32.vlgmr.msrb.gmra.mxu3 %v1029_v58 }
 0x656   : > { %v1069_v59 = vpop.f32.mrf.mxu3 }
 0x657   : > { %v1070_v60 = vadd.f32 %v1323_v50, %v1069_v59 }
 0x659   : > { %1265 = vmatpush.msk.msra.mxu0 %vm757_vm15, %v1070_v60 }
 0x65a   : > { %1266 = vmatmul.msk.f32.vlgmr.msra.gmra.mxu0 %vm754_vm1, %v1073_v62 }
 0x6d7   : > { %v1096_v63 = vpop.f32.mrf.mxu0 }
 0x6d8   : > { %v1099_v0 = vadd.f32 %v1096_v63, %v1824_v2 }
 0x6da   : > { %1100 = vst.msk [vmem:[%s296_s18] sm:$0xff] %vm303_vm0, %v1099_v0 }
 0x6db   : > { %1375 = shalt.err (!%p1372_p3)
}
 0x6dc   : > { %1271 = dma.vmem_to_hbm [thread:$0]  (%p1498_p5), %s1115_s19, 128, %s1117_s20, %s1102_s21  }
 0x6dd PF: > { %p1277_p4 = scmp.ge.s32.totalorder %s1410_s30, 2  ;;  %s1128_s25 = sand.u32 1, %s1398_s27  }
 0x6de   : > { %s1129_s13 = scalar_lea.sflag [#allocation3], %s1128_s25 }
 0x6df   : > { %p1274_p7 = pnand %p1277_p4, %p1502_p6 }
 0x6e1   : > { %p1275_p8 = pneg %p1274_p7 }
 0x6e3   : > { %1393 = dma.done.wait (%p1275_p8), %s1129_s13, 128  }
 0x6e4   : > { %1395 = vsyncadd (%p1275_p8), %s1129_s13, 4294967168  ;;  %p18_p9 = scmp.ge.s32.totalorder %s1485_s11, 4   ;;  %s1928_s27 = smov %s1402_s28 }
 0x6e5   : > { %s1929_s28 = smov %s1406_s29  ;;  %s1930_s29 = smov %s1496_s14 }
 0x6e6   : > { %s1931_s30 = smov %s1485_s11  ;;  %20 = sbr.rel (!%p18_p9) target bundleno = 3 (0x3), region = 99 }
 0x6eb   :  { %1135 = vsyncpa [#allocation3], 1 }
 0x6ec   :  { %1137 = vsyncpa [#allocation3 + $0x1], 1 }

</bundles_post_ra>
